<compile_context>
chip_gen: v6e
topology: v6e:2x2x1
jax: 0.10.0
libtpu: 0.0.40
codegen_flags: <defaults>
</compile_context>

<pallas_src>
import jax
import jax.numpy as jnp
from jax.experimental import pallas as pl
from jax.experimental.pallas import tpu as pltpu


def _frozen_ce_kernel(x_ref, y_ref, w_ref, loss_ref):
    x = x_ref[...]                      # (B, H+1) bf16, last column is ones (bias fold)
    w = w_ref[...]                      # (H+1, H) bf16, last row is the composed bias

    # Single MXU matmul (bf16 operands, f32 accumulation) == full frozen forward.
    logits = jnp.dot(x, w, preferred_element_type=jnp.float32)     # (B, H) f32

    # CrossEntropyLoss (integer targets, 'mean' reduction), max-stabilized, all f32.
    m = jnp.max(logits, axis=-1, keepdims=True)                     # (B, 1)
    lse = m + jnp.log(jnp.sum(jnp.exp(logits - m), axis=-1, keepdims=True))

    B, H = logits.shape
    cls_ids = jax.lax.broadcasted_iota(jnp.int32, (B, H), 1)
    # NOTE: assumes targets are in [0, H); out-of-range labels give tgt_logit = 0.
    tgt_mask = cls_ids == y_ref[...]                                 # y: (B, 1) int32
    tgt_logit = jnp.sum(jnp.where(tgt_mask, logits, 0.0), axis=-1, keepdims=True)

    per_example = lse - tgt_logit                                    # (B, 1) f32
    # Scalar mean straight to SMEM (no padded VMEM output tile).
    loss_ref[0, 0] = jnp.sum(per_example) * jnp.float32(1.0 / B)


def prepare_frozen_params(w0, b0, w1, b1):
    """Compose the two frozen affine layers ONCE (weights never change).

    Inputs are PyTorch-layout weights W (out, in) and biases b (out,).
    Returns a single (H+1, H) bf16 matrix: rows 0..H-1 are the composed weight
    in (in, out) layout, row H is the composed bias (consumed by a ones column
    appended to x), so the kernel does exactly one x @ W on the MXU.
    """
    w0 = jnp.asarray(w0, jnp.float32)
    b0 = jnp.asarray(b0, jnp.float32)
    w1 = jnp.asarray(w1, jnp.float32)
    b1 = jnp.asarray(b1, jnp.float32)
    ws_t = (w0 + w1).T                              # (in, out) of second stage
    w_comp = 2.0 * (w0.T @ ws_t)                    # (H, H) composed weight
    b_comp = 2.0 * (b0 @ ws_t) + b0 + b1            # (H,)   composed bias
    w_aug = jnp.concatenate([w_comp, b_comp.reshape(1, -1)], axis=0)   # (H+1, H)
    # Compose in f32 for accuracy, store bf16 for MXU-native operands / half the bytes.
    return w_aug.astype(jnp.bfloat16)


@jax.jit
def simple_frozen_model_forward(x, y, w_aug):
    """x: (B, H) f32, y: (B,) int, w_aug: (H+1, H) bf16 composed weight+bias."""
    B = x.shape[0]
    # Bias fold: append a ones column (fused into the launch under jit).
    x_aug = jnp.concatenate(
        [x.astype(jnp.bfloat16), jnp.ones((B, 1), jnp.bfloat16)], axis=1)

    vmem = pl.BlockSpec(memory_space=pltpu.MemorySpace.VMEM)
    smem = pl.BlockSpec(memory_space=pltpu.MemorySpace.SMEM)
    loss = pl.pallas_call(
        _frozen_ce_kernel,
        out_shape=jax.ShapeDtypeStruct((1, 1), jnp.float32),
        in_specs=[vmem, vmem, vmem],
        out_specs=smem,
    )(
        x_aug,
        y.reshape(B, 1).astype(jnp.int32),
        w_aug,
    )
    return loss[0, 0]


def _reference_forward_f32(x, y, w0, b0, w1, b1):
    """Straight jnp transcription of the PyTorch forward (sequential, all f32)."""
    h0 = x @ w0.T + b0
    x1 = h0 + h0
    x2 = (x1 @ w0.T + b0) + (x1 @ w1.T + b1)
    lse = jax.scipy.special.logsumexp(x2, axis=-1)
    tgt = jnp.take_along_axis(x2, y[:, None], axis=-1)[:, 0]
    return jnp.mean(lse - tgt)


def _reference_forward_composed_bf16(x, y, w_aug):
    """Same composed/bf16 math as the kernel (tight check of the kernel itself)."""
    B = x.shape[0]
    x_aug = jnp.concatenate(
        [x.astype(jnp.bfloat16), jnp.ones((B, 1), jnp.bfloat16)], axis=1)
    logits = jnp.dot(x_aug, w_aug, preferred_element_type=jnp.float32)
    lse = jax.scipy.special.logsumexp(logits, axis=-1)
    tgt = jnp.take_along_axis(logits, y[:, None], axis=-1)[:, 0]
    return jnp.mean(lse - tgt)


if __name__ == "__main__":
    hidden_dim = 32
    batch = 8

    key = jax.random.PRNGKey(0)
    kx, ky, kw0, kb0, kw1, kb1 = jax.random.split(key, 6)

    # Deterministic parameter init mimicking torch.nn.Linear default
    # (uniform in [-1/sqrt(in_features), 1/sqrt(in_features)]).
    bound = 1.0 / (hidden_dim ** 0.5)
    w0 = jax.random.uniform(kw0, (hidden_dim, hidden_dim), jnp.float32, -bound, bound)
    b0 = jax.random.uniform(kb0, (hidden_dim,), jnp.float32, -bound, bound)
    w1 = jax.random.uniform(kw1, (hidden_dim, hidden_dim), jnp.float32, -bound, bound)
    b1 = jax.random.uniform(kb1, (hidden_dim,), jnp.float32, -bound, bound)

    x = jax.random.normal(kx, (batch, hidden_dim), jnp.float32)
    y = jax.random.randint(ky, (batch,), 0, hidden_dim, jnp.int32)

    # One-time composition of the frozen affine layers, then the single-matmul kernel.
    w_aug = prepare_frozen_params(w0, b0, w1, b1)
    loss = simple_frozen_model_forward(x, y, w_aug)
    loss = jax.block_until_ready(loss)

    # Tight check against the identical composed/bf16 math (validates the kernel).
    ref_same_math = _reference_forward_composed_bf16(x, y, w_aug)
    assert jnp.allclose(loss, ref_same_math, atol=1e-4, rtol=1e-4), (loss, ref_same_math)

    # Semantic check against the sequential f32 PyTorch-style forward.
    # bf16 matmul operands + affine reassociation -> ~1e-3-level absolute error.
    ref_f32 = _reference_forward_f32(x, y, w0, b0, w1, b1)
    assert jnp.allclose(loss, ref_f32, atol=2e-2, rtol=2e-2), (loss, ref_f32)

    print("KERNEL_OK")
</pallas_src>

<mosaic_0001>
module attributes {stable_mosaic.version = 11 : i64} {
  func.func @_frozen_ce_kernel(%arg0: memref<8x33xbf16, #tpu.memory_space<vmem>>, %arg1: memref<8x1xi32, #tpu.memory_space<vmem>>, %arg2: memref<33x32xbf16, #tpu.memory_space<vmem>>, %arg3: memref<1x1xf32, #tpu.memory_space<smem>>) attributes {dimension_semantics = [], scalar_prefetch = 0 : i64, scratch_operands = 0 : i64, tpu.core_type = #tpu.core_type<tc>} {
    %c0 = arith.constant 0 : index
    %c0_0 = arith.constant 0 : index
    %0 = vector.load %arg0[%c0, %c0_0] : memref<8x33xbf16, #tpu.memory_space<vmem>>, vector<8x33xbf16>
    %c0_1 = arith.constant 0 : index
    %c0_2 = arith.constant 0 : index
    %1 = vector.load %arg2[%c0_1, %c0_2] : memref<33x32xbf16, #tpu.memory_space<vmem>>, vector<33x32xbf16>
    %cst = arith.constant dense<0.000000e+00> : vector<8x32xf32>
    %2 = tpu.matmul %0, %1, %cst {dimension_numbers = #tpu.dot_dimension_numbers<[1], [0], [0], [1], [0, 0, 1, 1], [], []>} : vector<8x33xbf16>, vector<33x32xbf16>, vector<8x32xf32> -> vector<8x32xf32>
    %cst_3 = arith.constant dense<0xFF800000> : vector<8xf32>
    %3 = vector.multi_reduction <maximumf>, %2, %cst_3 [1] : vector<8x32xf32> to vector<8xf32>
    %4 = vector.shape_cast %3 : vector<8xf32> to vector<8x1xf32>
    %5 = vector.broadcast %4 : vector<8x1xf32> to vector<8x32xf32>
    %6 = arith.subf %2, %5 : vector<8x32xf32>
    %7 = math.exp %6 : vector<8x32xf32>
    %cst_4 = arith.constant dense<0.000000e+00> : vector<8xf32>
    %8 = vector.multi_reduction <add>, %7, %cst_4 [1] : vector<8x32xf32> to vector<8xf32>
    %9 = vector.shape_cast %8 : vector<8xf32> to vector<8x1xf32>
    %10 = math.log %9 : vector<8x1xf32>
    %11 = arith.addf %4, %10 : vector<8x1xf32>
    %12 = tpu.iota {dimensions = array<i32: 1>} : vector<8x32xi32>
    %c0_5 = arith.constant 0 : index
    %c0_6 = arith.constant 0 : index
    %13 = vector.load %arg1[%c0_5, %c0_6] : memref<8x1xi32, #tpu.memory_space<vmem>>, vector<8x1xi32>
    %14 = vector.broadcast %13 : vector<8x1xi32> to vector<8x32xi32>
    %15 = arith.cmpi eq, %12, %14 : vector<8x32xi32>
    %cst_7 = arith.constant 0.000000e+00 : f32
    %16 = vector.broadcast %cst_7 : f32 to vector<8x32xf32>
    %17 = arith.select %15, %2, %16 : vector<8x32xi1>, vector<8x32xf32>
    %cst_8 = arith.constant dense<0.000000e+00> : vector<8xf32>
    %18 = vector.multi_reduction <add>, %17, %cst_8 [1] : vector<8x32xf32> to vector<8xf32>
    %19 = vector.shape_cast %18 : vector<8xf32> to vector<8x1xf32>
    %20 = arith.subf %11, %19 : vector<8x1xf32>
    %21 = vector.shape_cast %20 : vector<8x1xf32> to vector<1x8x1xf32>
    %cst_9 = arith.constant dense<0.000000e+00> : vector<1xf32>
    %22 = vector.multi_reduction <add>, %21, %cst_9 [1, 2] : vector<1x8x1xf32> to vector<1xf32>
    %23 = vector.shape_cast %22 : vector<1xf32> to vector<1x1x1xf32>
    %24 = vector.extract %23[0, 0, 0] : f32 from vector<1x1x1xf32>
    %cst_10 = arith.constant 1.250000e-01 : f32
    %25 = arith.mulf %24, %cst_10 : f32
    %c0_11 = arith.constant 0 : index
    %c0_12 = arith.constant 0 : index
    %26 = memref.load %arg3[%c0_11, %c0_12] : memref<1x1xf32, #tpu.memory_space<smem>>
    memref.store %25, %arg3[%c0_11, %c0_12] : memref<1x1xf32, #tpu.memory_space<smem>>
    return
  }
}

</mosaic_0001>

<bundles_post_ra>
// kernel: simple_frozen_model_forward.1
= control target key start
LH: loop header
LB: loop body
LE: loop exit
PB: predicated region body
PF: predicated region fallthrough
CT: control target
= control target key end

     0   :  { %v181_v1 = vmov 0.0   ;;  %vm41_vm0 = vcmask 1040384   ;;  %v182_v2 = vmov 0   ;;  %vm183_vm1 = vmmov 0   ;;  %s226_s0 = inlined_call_operand.vmem [shape: bf16[8,33], index: 0, kind: input, shape index: {}]   ;;  %s227_s1 = inlined_call_operand.vmem [shape: s32[8,1], index: 1, kind: input, shape index: {}]   ;;  %s228_s2 = inlined_call_operand.vmem [shape: bf16[33,32], index: 2, kind: input, shape index: {}]   ;;  %s229_s3 = inlined_call_operand.hbm [shape: f32[1,1], index: 3, kind: output, shape index: {}]  }
   0x1   :  { %v164_v0 = vld [vmem:[%s228_s2 + $0x10] ss:$0 sps:$4 sm:$0x11]   ;;  %147 = vmatprep.subr.bf16.mxu0 %v181_v1  ;;  %v43_v3 = vsel %vm41_vm0, 65535, %v182_v2  ;;  %163 = vset.pattern.permute.xlu0 %v182_v2 }
   0x2   :  { %v45_v4 = vand.u32 %v164_v0, %v43_v3  ;;  %153 = vmatprep.mubr.msk.bf16.mxu0 %vm183_vm1, %v181_v1 }
   0x3   :  { %8 = vsyncpa [#allocation3], 0  ;;  %v165_v5 = vld [vmem:[%s228_s2 + $0x8] sm:$0xff]   ;;  %v166_v6 = vld [vmem:[%s228_s2] sm:$0xff]   ;;  %vm37_vm2 = vcmask 269312   ;;  %vm87_vm3 = vcmask 261120   ;;  %v100_v17 = vlaneseq }
   0x4   :  { %148 = vmatpush3.bf16.msra.mxu0 %v45_v4  ;;  %v16_v7 = vld [vmem:[%s226_s0] sm:$0xf]  ;;  %vm112_vm5 = vcmask 7168   ;;  %s184_s2 = smov [#allocation2]  }
   0x5   :  { %149 = vmatprep.subr.bf16.mxu0 %v181_v1  ;;  %v102_v13 = vld [vmem:[%s227_s1] sm:$0xff]  ;;  %v101_v18 = vand.u32 127, %v100_v17 }
   0x8   :  { %150 = vmatpush3.bf16.msra.mxu0 %v165_v5 }
   0x9   :  { %151 = vmatprep.subr.bf16.mxu0 %v181_v1 }
   0xc   :  { %152 = vmatpush3.bf16.msra.mxu0 %v166_v6 }
   0xf   :  { %154 = vmatmul.mubr.msk.bf16.vlgmr.msra.gmra.mxu0 %vm37_vm2, %v16_v7 }
  0xcf   :  { %v81_v8 = vpop.f32.mrf.mxu0 }
  0xd0   :  { %v88_v9 = vsel %vm87_vm3, %v81_v8, -inf }
  0xd1   :  { %89 = vmax.xlane.f32.xlu0 %v88_v9  ;;  %v155_v10 = vpop.f32.mrf.mxu0 }
  0xd3   :  { %v84_v11 = vpop.f32.mrf.mxu0 }
  0xd5   :  { %v156_v12 = vpop.f32.mrf.mxu0 }
  0xe7   :  { %104 = vperm.xlu0 %163, %v102_v13  }
 0x15a   :  { %v90_v14 = vpop.xlane.xlu0 %89 }
 0x15b   :  { %v91_v15 = vsub.f32 %v81_v8, %v90_v14 }
 0x15d   :  { %v92_v16 = vmul.f32 1.442695, %v91_v15 }
 0x15f   :  { %167 = vpow2.f32 %v92_v16 }
 0x162   :  { %v105_v19 = vpop.permute.xlu0 %104 }
 0x163   :  { %vm106_vm4 = vcmp.eq.s32.totalorder %v101_v18, %v105_v19 }
 0x164   :  { %v107_v22 = vsel %vm106_vm4, %v81_v8, 0.0 }
 0x165   :  { %v108_v23 = vsel %vm87_vm3, %v107_v22, 0.0 }
 0x16c   :  { %v168_v20 = vpop.eup %167 }
 0x16d   :  { %v94_v21 = vsel %vm87_vm3, %v168_v20, 0.0 }
 0x16e   :  { %95 = vadd.xlane.f32.xlu1 %v94_v21 }
 0x172   :  { %109 = vadd.xlane.f32.xlu1 %v108_v23 }
 0x1f7   :  { %v96_v24 = vpop.xlane.xlu1 %95 }
 0x1f8   :  { %169 = vlog2.f32 %v96_v24 }
 0x1fb   :  { %v110_v28 = vpop.xlane.xlu1 %109 }
 0x205   :  { %v170_v25 = vpop.eup %169 }
 0x206   :  { %v98_v26 = vmul.f32 0.6931472, %v170_v25 }
 0x208   :  { %v99_v27 = vadd.f32 %v98_v26, %v90_v14 }
 0x20a   :  { %v111_v29 = vsub.f32 %v99_v27, %v110_v28 }
 0x20c   :  { %v113_v30 = vsel %vm112_vm5, %v111_v29, 0.0 }
 0x20d   :  { %114 = vadd.xlane.f32.xlu1 %v113_v30 }
 0x296   :  { %v115_v31 = vpop.xlane.xlu1 %114 }
 0x297   :  { %v116_v32 = vrot.slane %v115_v31, 4 }
 0x299   :  { %v117_v33 = vadd.f32 %v116_v32, %v115_v31 }
 0x29b   :  { %v118_v34 = vrot.slane %v117_v33, 2 }
 0x29d   :  { %v119_v35 = vadd.f32 %v118_v34, %v117_v33 }
 0x29f   :  { %v120_v36 = vrot.slane %v119_v35, 1 }
 0x2a1   :  { %v121_v37 = vadd.f32 %v120_v36, %v119_v35 }
 0x2a3   :  { %157 = vpush %v121_v37 }
 0x2d4   :  { %s158_s0 = spop %157 }
 0x2d5   :  { %s123_s1 = smul.f32 0.125, %s158_s0 }
 0x2d7   :  { %125 = sst [smem:[#allocation2]] %s123_s1 }
 0x2d8   :  { %133 = dma.smem_to_hbm %s184_s2, 16, %s229_s3, [#allocation3]  }
 0x2d9   :  { %179 = dma.done.wait [#allocation3], 16  }
 0x2da   :  { %180 = vsyncadd [#allocation3], 4294967280 }
 0x2db   :  { %137 = sfence }
 0x2dc   :  { %138 = vsyncpa [#allocation3], 1 }

</bundles_post_ra>
